<compile_context>
chip_gen: v6e
topology: v6e:2x2x1
jax: 0.10.0
libtpu: 0.0.40
codegen_flags: <defaults>
</compile_context>

<pallas_src>
import functools
import math

import jax
import jax.numpy as jnp
from jax.experimental import pallas as pl
from jax.experimental.pallas import tpu as pltpu

BN_EPS = 1e-5          # nn.BatchNorm1d default eps
NORM_EPS = 1e-12       # F.normalize default eps (clamp_min on the norm)
FEATURE_NUM = 512
CLS_NUM = 8
CLS_PAD = 128          # lane-dense padded class width
BACKBONE_OUT = 1000    # resnet50 logits width
BACKBONE_PAD = 1024    # padded to a multiple of 128
LANES = 128

MAX_B_TILE = 128       # batch rows per grid step (multiple of 16)


def _round_up(a, b):
    return -(-a // b) * b


def _vmem_capacity_bytes():
    """Best-effort per-core VMEM capacity; conservative (v7x) fallback."""
    try:
        info = pltpu.get_tpu_info()
        for attr in ("vmem_capacity_bytes", "vmem_bytes", "vmem_size_bytes"):
            v = getattr(info, attr, None)
            if v:
                return int(v)
    except Exception:
        pass
    return 64 * 1024 * 1024


def _invariant_spec(block_shape, index_map):
    """BlockSpec for grid-invariant operands: single-buffered when supported."""
    try:
        return pl.BlockSpec(block_shape, index_map, pipeline_mode=pl.Buffered(1))
    except (TypeError, AttributeError):
        return pl.BlockSpec(block_shape, index_map)


# --------------------------------------------------------------------------
# Kernel A: spatial sum of x (B*C rows, HW columns) on the MXU.
# --------------------------------------------------------------------------
def _pool_kernel(x_ref, ones_ref, pooled_ref):
    j = pl.program_id(2)

    @pl.when(j == 0)
    def _():
        pooled_ref[...] = jnp.zeros_like(pooled_ref)

    # (b_tile*C, hw_tile) bf16 @ (hw_tile, 128) bf16 ones -> every lane of the
    # f32 result holds the per-(b, c) row sum; accumulate into the revisited
    # output block (f32).
    pooled_ref[...] += jnp.dot(x_ref[...], ones_ref[...],
                               preferred_element_type=jnp.float32)


# --------------------------------------------------------------------------
# Kernel B: stem projection + BN-fold + LeakyReLU + FC + Arcsoftmax head.
# --------------------------------------------------------------------------
def _head_kernel(s, m, cls_num, n_ch,
                 pooled_ref, wstem_ref, bias_ref, wfc_ref, warc_ref,
                 feat_ref, arc_ref, h_scratch):
    bt = pooled_ref.shape[0]
    kp = wstem_ref.shape[1]                       # 1024
    pooled = pooled_ref[...]                      # (bt, C) f32, tiny

    # Stem C -> 1024 (folded BN scale + 1/HW), LeakyReLU(0.1), bf16 cast --
    # one 128-lane stripe at a time to bound vreg pressure, staged in VMEM.
    for ks in range(kp // LANES):
        lo = ks * LANES
        y = jnp.broadcast_to(bias_ref[0:1, lo:lo + LANES], (bt, LANES))
        for c in range(n_ch):
            y = y + pooled[:, c:c + 1] * wstem_ref[c:c + 1, lo:lo + LANES]
        h = jnp.where(y >= 0.0, y, 0.1 * y)
        h_scratch[:, lo:lo + LANES] = h.astype(jnp.bfloat16)

    # feature_net Linear(1000 -> 512, bias=False): bf16 MXU, f32 accumulation.
    feat = jnp.dot(h_scratch[...], wfc_ref[...],
                   preferred_element_type=jnp.float32)      # (bt, 512)
    feat_ref[...] = feat

    # Arcsoftmax(512, cls_num padded to 128) with s, m (exact normalization).
    nrm = jnp.sqrt(jnp.sum(feat * feat, axis=1, keepdims=True))
    x_n = feat / jnp.maximum(nrm, NORM_EPS)
    cosa = jnp.dot(x_n.astype(jnp.bfloat16), warc_ref[...],
                   preferred_element_type=jnp.float32) * 0.1     # dot/10
    # a = acos(cosa) in [0, pi]  =>  cos(a+m) = cosa*cos(m) - sqrt(1-cosa^2)*sin(m)
    sina = jnp.sqrt(jnp.maximum(1.0 - cosa * cosa, 0.0))
    cos_am = cosa * math.cos(m) - sina * math.sin(m)
    e = jnp.exp(s * cosa * 10.0)
    e_m = jnp.exp(s * cos_am * 10.0)
    # only the real `cls_num` classes enter the softmax denominator sum
    valid = jax.lax.broadcasted_iota(jnp.int32, cosa.shape, 1) < cls_num
    denom = jnp.sum(jnp.where(valid, e, 0.0), axis=1, keepdims=True) - e + e_m
    arc_ref[...] = e_m / denom


# --------------------------------------------------------------------------
# Wrapper
# --------------------------------------------------------------------------
def facenet_forward(x, params, s=1.0, m=1.0, *, max_b_tile=MAX_B_TILE):
    B, C, H, W = x.shape
    HW = H * W

    # ---- per-generation tiling: v5e/v6e 128 MiB VMEM, v7x 64 MiB / TC ------
    if _vmem_capacity_bytes() >= 100 * 1024 * 1024:
        max_hw_tile, vmem_limit = 16384, 80 * 1024 * 1024
    else:
        max_hw_tile, vmem_limit = 8192, 40 * 1024 * 1024

    # ---- fold eval-mode BN and the 1/HW of the average pool into the stem ---
    scale = params["bn_gamma"] * jax.lax.rsqrt(params["bn_var"] + BN_EPS)   # (1,1000)
    bias = params["bn_beta"] - params["bn_mean"] * scale                    # (1,1000)
    w_stem = params["w_stem"] * scale / float(HW)                           # (C,1000)

    pad_k = BACKBONE_PAD - BACKBONE_OUT
    w_stem = jnp.pad(w_stem, ((0, 0), (0, pad_k))).astype(jnp.float32)      # (C,1024)
    bias = jnp.pad(bias, ((0, 0), (0, pad_k))).astype(jnp.float32)          # (1,1024)
    w_fc = jnp.pad(params["w_fc"], ((0, pad_k), (0, 0))).astype(jnp.bfloat16)  # (1024,512)

    # ---- pre-normalize w_arc (batch-invariant) and pad classes to 128 -------
    w_arc = params["w_arc"]
    w_nrm = jnp.sqrt(jnp.sum(w_arc * w_arc, axis=0, keepdims=True))
    w_n = w_arc / jnp.maximum(w_nrm, NORM_EPS)
    w_n = jnp.pad(w_n, ((0, 0), (0, CLS_PAD - CLS_NUM))).astype(jnp.bfloat16)   # (512,128)

    # ---- tiling -------------------------------------------------------------
    b_tile = min(max_b_tile, _round_up(B, 16))   # b_tile*C multiple of 16 (bf16 sublanes)
    b_pad = _round_up(B, b_tile)
    nb = b_pad // b_tile
    hw_tile = min(max_hw_tile, _round_up(HW, 128))
    nchunks = pl.cdiv(HW, hw_tile)
    # With a single batch tile, split the HW reduction across an extra
    # "parallel" axis so both v7x TensorCores stream HBM; partials summed below.
    n_split = 2 if (nb == 1 and nchunks >= 2) else 1
    npj = pl.cdiv(nchunks, n_split)
    hw_pad = n_split * npj * hw_tile

    rows = b_pad * C
    x2 = x.reshape(B * C, HW)                                 # free (contiguous)
    x2 = jnp.pad(x2, ((0, rows - B * C), (0, hw_pad - HW))).astype(jnp.bfloat16)
    ones_hw = jnp.ones((hw_tile, LANES), jnp.bfloat16)

    # ---- kernel A: spatial sum ----------------------------------------------
    pooled_parts = pl.pallas_call(
        _pool_kernel,
        out_shape=jax.ShapeDtypeStruct((n_split, rows, LANES), jnp.float32),
        grid_spec=pltpu.PrefetchScalarGridSpec(
            num_scalar_prefetch=0,
            grid=(nb, n_split, npj),
            in_specs=[
                pl.BlockSpec((b_tile * C, hw_tile),
                             lambda i, sp, j: (i, sp * npj + j)),
                _invariant_spec((hw_tile, LANES), lambda i, sp, j: (0, 0)),
            ],
            out_specs=pl.BlockSpec((None, b_tile * C, LANES),
                                   lambda i, sp, j: (sp, i, 0)),
        ),
        compiler_params=pltpu.CompilerParams(
            dimension_semantics=("parallel", "parallel", "arbitrary"),
            vmem_limit_bytes=vmem_limit,
        ),
    )(x2, ones_hw)

    # tiny de-interleave of the (b, c) rows in the wrapper
    pooled = pooled_parts[:, :, 0].sum(axis=0).reshape(b_pad, C)   # (b_pad, C) f32

    # ---- kernel B: head ------------------------------------------------------
    head = functools.partial(_head_kernel, float(s), float(m), CLS_NUM, C)
    feat, arc = pl.pallas_call(
        head,
        out_shape=(jax.ShapeDtypeStruct((b_pad, FEATURE_NUM), jnp.float32),
                   jax.ShapeDtypeStruct((b_pad, CLS_PAD), jnp.float32)),
        grid_spec=pltpu.PrefetchScalarGridSpec(
            num_scalar_prefetch=0,
            grid=(nb,),
            in_specs=[
                pl.BlockSpec((b_tile, C), lambda i: (i, 0)),
                _invariant_spec((C, BACKBONE_PAD), lambda i: (0, 0)),
                _invariant_spec((1, BACKBONE_PAD), lambda i: (0, 0)),
                _invariant_spec((BACKBONE_PAD, FEATURE_NUM), lambda i: (0, 0)),
                _invariant_spec((FEATURE_NUM, CLS_PAD), lambda i: (0, 0)),
            ],
            out_specs=(
                pl.BlockSpec((b_tile, FEATURE_NUM), lambda i: (i, 0)),
                pl.BlockSpec((b_tile, CLS_PAD), lambda i: (i, 0)),
            ),
            scratch_shapes=[pltpu.VMEM((b_tile, BACKBONE_PAD), jnp.bfloat16)],
        ),
        compiler_params=pltpu.CompilerParams(
            dimension_semantics=("parallel",),
            vmem_limit_bytes=32 * 1024 * 1024,
        ),
    )(pooled, w_stem, bias, w_fc, w_n)

    return feat[:B], arc[:B, :CLS_NUM]


# --------------------------------------------------------------------------
# Pure-JAX reference (same stand-in backbone) for a sanity check.
# --------------------------------------------------------------------------
def facenet_reference(x, params, s=1.0, m=1.0):
    B, C, H, W = x.shape
    pooled = x.reshape(B, C, H * W).mean(axis=2)                       # avg pool
    y = pooled @ params["w_stem"]                                      # C -> 1000
    y = ((y - params["bn_mean"]) * params["bn_gamma"]
         * jax.lax.rsqrt(params["bn_var"] + BN_EPS) + params["bn_beta"])
    h = jnp.where(y >= 0.0, y, 0.1 * y)                                # LeakyReLU(0.1)
    feat = h @ params["w_fc"]                                          # 1000 -> 512
    x_n = feat / jnp.maximum(
        jnp.sqrt(jnp.sum(feat * feat, axis=1, keepdims=True)), NORM_EPS)
    w_n = params["w_arc"] / jnp.maximum(
        jnp.sqrt(jnp.sum(params["w_arc"] ** 2, axis=0, keepdims=True)), NORM_EPS)
    cosa = (x_n @ w_n) / 10.0
    a = jnp.arccos(cosa)
    e = jnp.exp(s * cosa * 10.0)
    e_m = jnp.exp(s * jnp.cos(a + m) * 10.0)
    arc = e_m / (jnp.sum(e, axis=1, keepdims=True) - e + e_m)
    return feat, arc


def init_params(key, in_channels):
    k_stem, k_fc, k_arc = jax.random.split(key, 3)
    return {
        # sub_net stand-in projection C -> 1000 (deterministic)
        "w_stem": jax.random.normal(k_stem, (in_channels, BACKBONE_OUT),
                                    jnp.float32) * 0.1,
        # BatchNorm1d(1000) default init (eval-mode running stats)
        "bn_gamma": jnp.ones((1, BACKBONE_OUT), jnp.float32),
        "bn_beta": jnp.zeros((1, BACKBONE_OUT), jnp.float32),
        "bn_mean": jnp.zeros((1, BACKBONE_OUT), jnp.float32),
        "bn_var": jnp.ones((1, BACKBONE_OUT), jnp.float32),
        # nn.Linear(1000, 512, bias=False)
        "w_fc": jax.random.normal(k_fc, (BACKBONE_OUT, FEATURE_NUM),
                                  jnp.float32) * (1.0 / math.sqrt(BACKBONE_OUT)),
        # Arcsoftmax.w = torch.randn((512, 8))
        "w_arc": jax.random.normal(k_arc, (FEATURE_NUM, CLS_NUM), jnp.float32),
    }


if __name__ == "__main__":
    key = jax.random.PRNGKey(0)
    k_x, k_p = jax.random.split(key)

    B, C, H, W = 2, 4, 16, 16                       # small NCHW image
    x = jax.random.normal(k_x, (B, C, H, W), jnp.float32)
    params = init_params(k_p, C)

    feature, arcsoftmax = facenet_forward(x, params, s=1.0, m=1.0)
    feature = jax.block_until_ready(feature)
    arcsoftmax = jax.block_until_ready(arcsoftmax)

    assert feature.shape == (B, FEATURE_NUM)
    assert arcsoftmax.shape == (B, CLS_NUM)
    assert bool(jnp.all(jnp.isfinite(feature)))
    assert bool(jnp.all(jnp.isfinite(arcsoftmax)))

    feat_ref, arc_ref = facenet_reference(x, params, 1.0, 1.0)
    assert bool(jnp.allclose(feature, feat_ref, rtol=0.1, atol=2e-3))
    assert bool(jnp.allclose(arcsoftmax, arc_ref, rtol=0.2, atol=1e-5))

    print("KERNEL_OK")
</pallas_src>

<mosaic_0001>
module attributes {stable_mosaic.version = 11 : i64} {
  func.func @_pool_kernel(%arg0: i32, %arg1: i32, %arg2: i32, %arg3: memref<64x256xbf16, #tpu.memory_space<vmem>>, %arg4: memref<256x128xbf16, #tpu.memory_space<vmem>>, %arg5: memref<1x64x128xf32, #tpu.memory_space<vmem>>) attributes {dimension_semantics = [#tpu.dimension_semantics<parallel>, #tpu.dimension_semantics<parallel>, #tpu.dimension_semantics<arbitrary>], iteration_bounds = array<i64: 1, 1, 1>, scalar_prefetch = 0 : i64, scratch_operands = 0 : i64, tpu.core_type = #tpu.core_type<tc>, window_params = [{transform_indices = @transform_0, window_bounds = array<i64: 64, 256>}, {pipeline_mode = #tpu.pipeline_mode<synchronous>, transform_indices = @transform_1, window_bounds = array<i64: 256, 128>}, {transform_indices = @transform_2, window_bounds = array<i64: 1, 64, 128>}]} {
    %c0_i32 = arith.constant 0 : i32
    %0 = arith.cmpi eq, %arg2, %c0_i32 : i32
    %1 = arith.extui %0 : i1 to i32
    %c0_i32_0 = arith.constant 0 : i32
    %2 = arith.cmpi ne, %1, %c0_i32_0 : i32
    scf.if %2 {
      %cst_10 = arith.constant 0.000000e+00 : f32
      %12 = vector.broadcast %cst_10 : f32 to vector<64x128xf32>
      %c0_11 = arith.constant 0 : index
      %c0_12 = arith.constant 0 : index
      %c0_13 = arith.constant 0 : index
      %13 = vector.load %arg5[%c0_11, %c0_12, %c0_13] : memref<1x64x128xf32, #tpu.memory_space<vmem>>, vector<1x64x128xf32>
      %14 = vector.shape_cast %13 : vector<1x64x128xf32> to vector<64x128xf32>
      %15 = vector.shape_cast %12 : vector<64x128xf32> to vector<1x64x128xf32>
      tpu.vector_store %arg5[%c0_11, %c0_12, %c0_13], %15 {strides = array<i32>} : memref<1x64x128xf32, #tpu.memory_space<vmem>>, vector<1x64x128xf32>,
    } else {
    }
    %c0 = arith.constant 0 : index
    %c0_1 = arith.constant 0 : index
    %c0_2 = arith.constant 0 : index
    %3 = vector.load %arg5[%c0, %c0_1, %c0_2] : memref<1x64x128xf32, #tpu.memory_space<vmem>>, vector<1x64x128xf32>
    %4 = vector.shape_cast %3 : vector<1x64x128xf32> to vector<64x128xf32>
    %c0_3 = arith.constant 0 : index
    %c0_4 = arith.constant 0 : index
    %5 = vector.load %arg3[%c0_3, %c0_4] : memref<64x256xbf16, #tpu.memory_space<vmem>>, vector<64x256xbf16>
    %c0_5 = arith.constant 0 : index
    %c0_6 = arith.constant 0 : index
    %6 = vector.load %arg4[%c0_5, %c0_6] : memref<256x128xbf16, #tpu.memory_space<vmem>>, vector<256x128xbf16>
    %cst = arith.constant dense<0.000000e+00> : vector<64x128xf32>
    %7 = tpu.matmul %5, %6, %cst {dimension_numbers = #tpu.dot_dimension_numbers<[1], [0], [0], [1], [0, 0, 1, 1], [], []>} : vector<64x256xbf16>, vector<256x128xbf16>, vector<64x128xf32> -> vector<64x128xf32>
    %8 = arith.addf %4, %7 : vector<64x128xf32>
    %c0_7 = arith.constant 0 : index
    %c0_8 = arith.constant 0 : index
    %c0_9 = arith.constant 0 : index
    %9 = vector.load %arg5[%c0_7, %c0_8, %c0_9] : memref<1x64x128xf32, #tpu.memory_space<vmem>>, vector<1x64x128xf32>
    %10 = vector.shape_cast %9 : vector<1x64x128xf32> to vector<64x128xf32>
    %11 = vector.shape_cast %8 : vector<64x128xf32> to vector<1x64x128xf32>
    tpu.vector_store %arg5[%c0_7, %c0_8, %c0_9], %11 {strides = array<i32>} : memref<1x64x128xf32, #tpu.memory_space<vmem>>, vector<1x64x128xf32>,
    return
  }
  func.func @transform_0(%arg0: i32, %arg1: i32, %arg2: i32) -> (i32, i32) {
    %c1_i32 = arith.constant 1 : i32
    %0 = arith.muli %arg1, %c1_i32 : i32
    %1 = arith.addi %0, %arg2 : i32
    %c0_i32 = arith.constant 0 : i32
    return %arg0, %1 : i32, i32
  }
  func.func @transform_1(%arg0: i32, %arg1: i32, %arg2: i32) -> (i32, i32) {
    %c0_i32 = arith.constant 0 : i32
    %c0_i32_0 = arith.constant 0 : i32
    %c0_i32_1 = arith.constant 0 : i32
    return %c0_i32, %c0_i32_0 : i32, i32
  }
  func.func @transform_2(%arg0: i32, %arg1: i32, %arg2: i32) -> (i32, i32, i32) {
    %c0_i32 = arith.constant 0 : i32
    %c0_i32_0 = arith.constant 0 : i32
    return %arg1, %arg0, %c0_i32 : i32, i32, i32
  }
}

</mosaic_0001>

<bundles_post_ra>
// kernel: tpu_custom_call.1
= control target key start
LH: loop header
LB: loop body
LE: loop exit
PB: predicated region body
PF: predicated region fallthrough
CT: control target
= control target key end

     0   :  { %7 = vsyncpa [#allocation3], 0  ;;  %s561_s0 = inlined_call_operand.hbm [shape: bf16[64,256], index: 0, kind: input, shape index: {}]   ;;  %s562_s1 = inlined_call_operand.hbm [shape: bf16[256,128], index: 1, kind: input, shape index: {}]   ;;  %s563_s2 = inlined_call_operand.hbm [shape: f32[1,64,128], index: 2, kind: output, shape index: {}]  }
   0x1   :  { %8 = vsyncpa [#allocation6], 0 }
   0x2   :  { %9 = vsyncpa [#allocation4], 0  ;;  %s524_s9 = smov [#allocation2]  }
   0x3   :  { %s19_s10 = sshll.u32 %s524_s9, 4  ;;  %s20_s10 = int_to_ptr.vmem [resolvable:$true] %s19_s10 }
   0x4   :  { %s466_s11 = scalar_lea.vmem %s20_s10, 1024  ;;  %p471_p1 = scmp.lt.s32.totalorder %s20_s10, %s20_s10 }
   0x5   :  { %p467_p0 = scmp.ne.s32.totalorder %s20_s10, %s466_s11  ;;  %p472_p2 = scmp.lt.s32.totalorder %s466_s11, %s466_s11 }
   0x7   :  { %p473_p3 = por %p472_p2, %p471_p1 }
   0x9   :  { %p474_p4 = pnand %p473_p3, %p467_p0 }
   0xb   :  { %477 = shalt.err (!%p474_p4)
}
   0xc   :  { %s525_s12 = smov 128   ;;  %s526_s13 = smov 8  }
   0xd   :  { %25 = dma.hbm_to_vmem [thread:$0]  %s561_s0, 1024, %s20_s10, [#allocation3], %s525_s12, %s525_s12, %s526_s13  }
   0xe   :  { %s527_s16 = smov [#allocation5]  }
   0xf   :  { %s31_s17 = sshll.u32 %s527_s16, 4  ;;  %s32_s17 = int_to_ptr.vmem [resolvable:$true] %s31_s17 }
  0x10   :  { %s486_s18 = scalar_lea.vmem %s32_s17, 2048  ;;  %p491_p6 = scmp.lt.s32.totalorder %s32_s17, %s32_s17 }
  0x11   :  { %p487_p5 = scmp.ne.s32.totalorder %s32_s17, %s486_s18  ;;  %p492_p7 = scmp.lt.s32.totalorder %s486_s18, %s486_s18 }
  0x13   :  { %p493_p8 = por %p492_p7, %p491_p6 }
  0x15   :  { %p494_p9 = pnand %p493_p8, %p487_p5 }
  0x17   :  { %497 = shalt.err (!%p494_p9)
}
  0x18   :  { %s528_s19 = smov 64   ;;  %s529_s20 = smov 4  }
  0x19   :  { %37 = dma.hbm_to_vmem [thread:$0]  %s562_s1, 2048, %s32_s17, [#allocation6], %s528_s19, %s528_s19, %s529_s20  }
  0x1a   :  { %518 = dma.done.wait [#allocation3], 1024  }
  0x1b   :  { %519 = vsyncadd [#allocation3], 4294966272 }
  0x1c   :  { %520 = dma.done.wait [#allocation6], 2048  }
  0x1d   :  { %521 = vsyncadd [#allocation6], 4294965248  ;;  %v430_v0 = vld [vmem:[#allocation5 + $0x78] sm:$0xff]   ;;  %v432_v2 = vld [vmem:[#allocation5 + $0x70] sm:$0xff]   ;;  %s530_s0 = smov [#allocation7]  }
  0x1e   :  { %v431_v1 = vld [vmem:[#allocation5 + $0x38] sm:$0xff]   ;;  %366 = vmatprep.subr.bf16.mxu0 %v430_v0  ;;  %406 = vmatprep.subr.bf16.mxu1 %v430_v0  ;;  %v433_v3 = vld [vmem:[#allocation5 + $0x30] sm:$0xff]   ;;  %v434_v4 = vld [vmem:[#allocation5 + $0x68] sm:$0xff]   ;;  %s329_s1 = sshll.u32 %s530_s0, 4  ;;  %s330_s1 = int_to_ptr.vmem [resolvable:$true] %s329_s1 }
  0x1f   :  { %367 = vmatpush3.bf16.msra.mxu0 %v431_v1  ;;  %414 = vmatpush3.bf16.msra.mxu1 %v431_v1  ;;  %v435_v5 = vld [vmem:[#allocation5 + $0x28] sm:$0xff]   ;;  %v436_v6 = vld [vmem:[#allocation5 + $0x60] sm:$0xff]   ;;  %v438_v8 = vld [vmem:[#allocation5 + $0x58] sm:$0xff]   ;;  %s498_s23 = scalar_lea.vmem %s330_s1, 1024  ;;  %p503_p11 = scmp.lt.s32.totalorder %s330_s1, %s330_s1 }
  0x20   :  { %368 = vmatprep.subr.bf16.mxu0 %v432_v2  ;;  %407 = vmatprep.subr.bf16.mxu1 %v432_v2  ;;  %v437_v7 = vld [vmem:[#allocation5 + $0x20] sm:$0xff]   ;;  %v439_v9 = vld [vmem:[#allocation5 + $0x18] sm:$0xff]   ;;  %v440_v10 = vld [vmem:[#allocation5 + $0x50] sm:$0xff]   ;;  %p499_p10 = scmp.ne.s32.totalorder %s330_s1, %s498_s23  ;;  %p504_p12 = scmp.lt.s32.totalorder %s498_s23, %s498_s23 }
  0x21   :  { %v448_v11 = vld [vmem:[#allocation2 + $0x4] ss:$8 sps:$4 sm:$0xff]   ;;  %v441_v13 = vld [vmem:[#allocation5 + $0x10] sm:$0xff]   ;;  %v446_v18 = vld [vmem:[#allocation2] ss:$8 sps:$4 sm:$0xff]  }
  0x22   :  { %v451_v12 = vld [vmem:[#allocation2 + $0x24] ss:$8 sps:$4 sm:$0xff]   ;;  %275 = vmatprep.mubr.bf16.mxu0 %v448_v11  ;;  %v449_v19 = vld [vmem:[#allocation2 + $0x20] ss:$8 sps:$4 sm:$0xff]   ;;  %v452_v20 = vld [vmem:[#allocation2 + $0x14] ss:$8 sps:$4 sm:$0xff]   ;;  %p505_p13 = por %p504_p12, %p503_p11 }
  0x23   :  { %369 = vmatpush3.bf16.msra.mxu0 %v433_v3  ;;  %415 = vmatpush3.bf16.msra.mxu1 %v433_v3  ;;  %v442_v14 = vld [vmem:[#allocation5 + $0x48] sm:$0xff]   ;;  %v444_v16 = vld [vmem:[#allocation5 + $0x40] sm:$0xff]   ;;  %v454_v21 = vld [vmem:[#allocation2 + $0x34] ss:$8 sps:$4 sm:$0xff]  }
  0x24   :  { %370 = vmatprep.subr.bf16.mxu0 %v434_v4  ;;  %408 = vmatprep.subr.bf16.mxu1 %v434_v4  ;;  %v443_v15 = vld [vmem:[#allocation5 + $0x8] sm:$0xff]   ;;  %v445_v17 = vld [vmem:[#allocation5] sm:$0xff]   ;;  %v456_v22 = vld [vmem:[#allocation2 + $0x10] ss:$8 sps:$4 sm:$0xff]   ;;  %p506_p0 = pnand %p505_p13, %p499_p10 }
  0x25   :  { %291 = vmatprep.mubr.bf16.mxu1 %v451_v12  ;;  %v457_v23 = vld [vmem:[#allocation2 + $0x30] ss:$8 sps:$4 sm:$0xff]  }
  0x27   :  { %371 = vmatpush3.bf16.msra.mxu0 %v435_v5  ;;  %416 = vmatpush3.bf16.msra.mxu1 %v435_v5 }
  0x28   :  { %372 = vmatprep.subr.bf16.mxu0 %v436_v6  ;;  %409 = vmatprep.subr.bf16.mxu1 %v436_v6 }
  0x2b   :  { %373 = vmatpush3.bf16.msra.mxu0 %v437_v7  ;;  %417 = vmatpush3.bf16.msra.mxu1 %v437_v7 }
  0x2c   :  { %374 = vmatprep.subr.bf16.mxu0 %v438_v8  ;;  %410 = vmatprep.subr.bf16.mxu1 %v438_v8 }
  0x2f   :  { %375 = vmatpush3.bf16.msra.mxu0 %v439_v9  ;;  %418 = vmatpush3.bf16.msra.mxu1 %v439_v9 }
  0x30   :  { %376 = vmatprep.subr.bf16.mxu0 %v440_v10  ;;  %411 = vmatprep.subr.bf16.mxu1 %v440_v10 }
  0x33   :  { %377 = vmatpush3.bf16.msra.mxu0 %v441_v13  ;;  %419 = vmatpush3.bf16.msra.mxu1 %v441_v13 }
  0x34   :  { %378 = vmatprep.subr.bf16.mxu0 %v442_v14  ;;  %412 = vmatprep.subr.bf16.mxu1 %v442_v14 }
  0x37   :  { %379 = vmatpush3.bf16.msra.mxu0 %v443_v15  ;;  %420 = vmatpush3.bf16.msra.mxu1 %v443_v15 }
  0x38   :  { %380 = vmatprep.subr.bf16.mxu0 %v444_v16  ;;  %413 = vmatprep.subr.bf16.mxu1 %v444_v16 }
  0x3b   :  { %381 = vmatpush3.bf16.msra.mxu0 %v445_v17  ;;  %421 = vmatpush3.bf16.msra.mxu1 %v445_v17 }
  0x3e   :  { %276 = vmatmul.mubr.bf16.vlgmr.msra.gmra.mxu0 %v446_v18  ;;  %292 = vmatmul.mubr.bf16.vlgmr.msra.gmra.mxu1 %v449_v19 }
  0x3f   :  { %283 = vmatprep.mubr.bf16.mxu0 %v452_v20  ;;  %299 = vmatprep.mubr.bf16.mxu1 %v454_v21 }
  0x46   :  { %284 = vmatmul.mubr.bf16.gmra.mxu0 %v456_v22  ;;  %300 = vmatmul.mubr.bf16.gmra.mxu1 %v457_v23 }
  0xfe   :  { %v382_v24 = vpop.f32.mrf.mxu0  ;;  %v394_v25 = vpop.f32.mrf.mxu1 }
 0x100   :  { %v383_v26 = vpop.f32.mrf.mxu0  ;;  %v395_v27 = vpop.f32.mrf.mxu1 }
 0x101   :  { %v384_v28 = vadd.f32 %v383_v26, %v382_v24  ;;  %v396_v29 = vadd.f32 %v395_v27, %v394_v25 }
 0x102   :  { %v385_v30 = vpop.f32.mrf.mxu0  ;;  %v397_v31 = vpop.f32.mrf.mxu1 }
 0x103   :  { %316 = vst [vmem:[#allocation7] sm:$0xff] %v384_v28  ;;  %320 = vst [vmem:[#allocation7 + $0x20] sm:$0xff] %v396_v29 }
 0x104   :  { %v386_v32 = vpop.f32.mrf.mxu0  ;;  %v398_v33 = vpop.f32.mrf.mxu1 }
 0x105   :  { %v387_v34 = vadd.f32 %v386_v32, %v385_v30  ;;  %v399_v35 = vadd.f32 %v398_v33, %v397_v31 }
 0x106   :  { %v388_v36 = vpop.f32.mrf.mxu0  ;;  %v400_v37 = vpop.f32.mrf.mxu1 }
 0x107   :  { %317 = vst [vmem:[#allocation7 + $0x8] sm:$0xff] %v387_v34  ;;  %321 = vst [vmem:[#allocation7 + $0x28] sm:$0xff] %v399_v35 }
 0x108   :  { %v389_v38 = vpop.f32.mrf.mxu0  ;;  %v401_v39 = vpop.f32.mrf.mxu1 }
 0x109   :  { %v390_v40 = vadd.f32 %v389_v38, %v388_v36  ;;  %v402_v41 = vadd.f32 %v401_v39, %v400_v37 }
 0x10a   :  { %v391_v42 = vpop.f32.mrf.mxu0  ;;  %v403_v43 = vpop.f32.mrf.mxu1 }
 0x10b   :  { %318 = vst [vmem:[#allocation7 + $0x10] sm:$0xff] %v390_v40  ;;  %322 = vst [vmem:[#allocation7 + $0x30] sm:$0xff] %v402_v41 }
 0x10c   :  { %v392_v44 = vpop.f32.mrf.mxu0  ;;  %v404_v45 = vpop.f32.mrf.mxu1 }
 0x10d   :  { %v393_v46 = vadd.f32 %v392_v44, %v391_v42  ;;  %v405_v47 = vadd.f32 %v404_v45, %v403_v43 }
 0x10f   :  { %319 = vst [vmem:[#allocation7 + $0x18] sm:$0xff] %v393_v46  ;;  %323 = vst [vmem:[#allocation7 + $0x38] sm:$0xff] %v405_v47 }
 0x110   :  { %509 = shalt.err (!%p506_p0)
}
 0x111   :  { %335 = dma.vmem_to_hbm [thread:$0]  %s330_s1, 1024, %s563_s2, [#allocation4], %s525_s12, %s525_s12, %s526_s13  }
 0x112   :  { %522 = dma.done.wait [#allocation4], 1024  }
 0x113   :  { %523 = vsyncadd [#allocation4], 4294966272 }
 0x114   :  { %339 = vsyncpa [#allocation3], 1 }
 0x115   :  { %340 = vsyncpa [#allocation6], 1 }
 0x116   :  { %341 = vsyncpa [#allocation4], 1 }

</bundles_post_ra>
